<compile_context>
chip_gen: v5e
topology: v5e:2x2
jax: 0.10.0
libtpu: 0.0.40
codegen_flags: <defaults>
</compile_context>

<pallas_src>
import numpy as np
import jax
import jax.numpy as jnp
from jax.experimental import pallas as pl
from jax.experimental.pallas import tpu as pltpu


# ----------------------------- spec helpers ----------------------------------
def get_min_max(similarity, activation, d):
    """Min/max attainable similarity for the embedding space (mirrors spec)."""
    if similarity == 'dot':
        max_similarity = d
        min_similarity = 0
        if activation == 'tanh':
            min_similarity = -d
    elif similarity == 'l2':
        max_similarity = 0
        min_similarity = -(d ** 0.5)
        if activation == 'tanh':
            min_similarity *= 2
    elif similarity == 'l1':
        max_similarity = 0
        min_similarity = -d
        if activation == 'tanh':
            min_similarity *= 2
    else:
        # Original get_min_max leaves 'cos' undefined (UnboundLocalError in
        # PyTorch); surface it explicitly. hard_sim_mask() still supports
        # 'cos' when called with an explicit threshold.
        raise ValueError(f"get_min_max is undefined for similarity={similarity!r}")
    return (min_similarity, max_similarity)


# ------------------------------- kernels --------------------------------------
def _make_matmul_kernel(similarity, neg_fill, threshold, d):
    """dot / cos / l2: MXU matmul in native dtype + f32 accumulation."""
    inv_d = 1.0 / d

    def kernel(*refs):
        x_ref, xnT_ref = refs[0], refs[1]
        out_ref = refs[-1]
        # xnT is already (K, N): canonical MXU orientation, no per-step relayout.
        xy = jnp.dot(x_ref[...], xnT_ref[...], preferred_element_type=jnp.float32)

        if similarity == 'dot':
            sim = xy * inv_d
        elif similarity == 'cos':
            inv_n = refs[2][...]                               # (1, tile_m), hoisted
            x32 = x_ref[...].astype(jnp.float32)
            # 1/max(||v||, 1e-12) == rsqrt(max(||v||^2, 1e-24))
            inv_x = jax.lax.rsqrt(jnp.maximum(
                jnp.sum(x32 * x32, axis=-1, keepdims=True), 1e-24))  # (tile_n, 1)
            sim = xy * inv_x * inv_n
        else:  # 'l2'
            xn2 = refs[2][...]                                 # (1, tile_m), hoisted
            x32 = x_ref[...].astype(jnp.float32)
            x2 = jnp.sum(x32 * x32, axis=-1, keepdims=True)    # (tile_n, 1)
            sim = -jnp.sqrt(jnp.maximum(x2 + xn2 - 2.0 * xy, 0.0))

        out_ref[...] = jnp.where(sim < threshold, neg_fill, sim).astype(out_ref.dtype)

    return kernel


def _make_l1_kernel(neg_fill, threshold, d):
    """l1: accumulate |x[:,k] - x_n[:,k]^T| over d into a lane-dense slab."""
    def kernel(x_ref, xnT_ref, out_ref):
        # x_n arrives pre-transposed (d, m) and pre-cast to f32 (hoisted).
        # Only (tile_n,1)x(1,tile_m) VPU broadcasts: no XLU lane reduces, no
        # per-row masked stores; one full-width store at the end.
        # TODO(synk): for large d, switch the static unroll to a chunked
        #             fori_loop over d to bound generated code size.
        x32 = x_ref[...].astype(jnp.float32)                   # (tile_n, d)
        acc = jnp.zeros(out_ref.shape, jnp.float32)            # (tile_n, tile_m)
        for k in range(d):                                     # static unroll
            acc = acc + jnp.abs(x32[:, k:k + 1] - xnT_ref[k:k + 1, :])
        sim = -acc
        out_ref[...] = jnp.where(sim < threshold, neg_fill, sim).astype(out_ref.dtype)

    return kernel


# --------------------------- tiling heuristics ---------------------------------
def _round_up(v, q):
    return ((v + q - 1) // q) * q


def _vmem_capacity_bytes():
    try:
        return int(pltpu.get_tpu_info().vmem_capacity_bytes)
    except Exception:
        return 64 * 1024 * 1024   # conservative fallback (v7x per-TensorCore)


def _pick_tiles(n, m_pad, d, in_bytes, out_bytes, similarity):
    """Pick (tile_n, tile_m): prefer x_n resident (tile_m=m_pad), biggest tile_n."""
    budget = int(_vmem_capacity_bytes() * 0.5)   # headroom for compiler scratch

    def est(tn, tm):
        b = 2 * tn * d * in_bytes            # x tile (double-buffered)
        b += 2 * d * tm * in_bytes           # x_n^T tile (double-buffered)
        b += 2 * tm * 4                      # hoisted (1, m) norm row
        b += 2 * tn * tm * out_bytes         # out tile (double-buffered)
        b += 4 * tn * tm * 4                 # in-kernel f32 temporaries
        return b

    tn_opts = sorted({min(t, n) for t in (512, 256, 128, 64, 32, 16, 8)}, reverse=True)
    if similarity == 'l1':
        # Keep the statically-unrolled l1 body at a sane code size.
        tn_opts = [t for t in tn_opts if t <= 128] or [min(n, 128)]

    tm_opts = [m_pad]
    t = m_pad
    while t > 128:
        t = _round_up(t // 2, 128)
        tm_opts.append(t)

    best = None
    for tm in tm_opts:
        for tn in tn_opts:
            if est(tn, tm) <= budget:
                if best is None:
                    best = (tn, tm)
                if tn >= 128 or tn == n:
                    return tn, tm
                break   # tn only shrinks from here; try a smaller tm instead
    if best is not None:
        return best
    return tn_opts[-1], (128 if m_pad >= 128 else m_pad)


# ------------------------------- wrapper ---------------------------------------
def hard_sim_mask(x, x_n, similarity, threshold, agg=None, out_dtype=None,
                  tile_n=None, tile_m=None):
    """Pallas-TPU HardSimMask forward. `threshold` is a static Python float."""
    if agg not in (None, 'mean'):
        raise ValueError(f"unsupported agg={agg!r}")
    if similarity not in ('dot', 'cos', 'l2', 'l1'):
        raise ValueError(f"unknown similarity: {similarity!r}")

    n, d = x.shape
    m, d2 = x_n.shape
    assert d == d2, "feature dims must match"
    out_dtype = x.dtype if out_dtype is None else jnp.dtype(out_dtype)
    threshold = float(threshold)
    # agg=None  -> sim - inf*mask == -inf where masked
    # agg='mean'-> sim * (1 - mask) == 0  where masked
    neg_fill = 0.0 if agg == 'mean' else -jnp.inf

    # ---- hoisted x_n-invariant prep (runs once, outside the grid) ------------
    m_pad = max(_round_up(m, 128), 128)            # lane-dense output axis
    xn_t = x_n.T                                   # (d, m): canonical (K, N)
    if similarity == 'l1':
        xn_t = xn_t.astype(jnp.float32)            # hoist the per-step cast
    if m_pad != m:
        xn_t = jnp.pad(xn_t, ((0, 0), (0, m_pad - m)))

    extra_inputs = []
    if similarity in ('cos', 'l2'):
        xn32 = x_n.astype(jnp.float32)
        xn_sq = jnp.sum(xn32 * xn32, axis=1)[None, :]                   # (1, m)
        row = jax.lax.rsqrt(jnp.maximum(xn_sq, 1e-24)) if similarity == 'cos' else xn_sq
        if m_pad != m:
            row = jnp.pad(row, ((0, 0), (0, m_pad - m)))
        extra_inputs.append(row)

    # ---- tiling ----------------------------------------------------------------
    in_bytes = max(x.dtype.itemsize, xn_t.dtype.itemsize)
    out_bytes = jnp.dtype(out_dtype).itemsize
    auto_tn, auto_tm = _pick_tiles(n, m_pad, d, in_bytes, out_bytes, similarity)
    tile_n = auto_tn if tile_n is None else min(int(tile_n), n)
    tile_m = auto_tm if tile_m is None else min(_round_up(int(tile_m), 128), m_pad)
    grid = (pl.cdiv(n, tile_n), pl.cdiv(m_pad, tile_m))

    if similarity == 'l1':
        kernel = _make_l1_kernel(neg_fill, threshold, d)
    else:
        kernel = _make_matmul_kernel(similarity, neg_fill, threshold, d)

    in_specs = [
        pl.BlockSpec((tile_n, d), lambda i, j: (i, 0)),    # x row tile (pipelined)
        pl.BlockSpec((d, tile_m), lambda i, j: (0, j)),    # x_n^T column tile
    ]
    if extra_inputs:
        in_specs.append(pl.BlockSpec((1, tile_m), lambda i, j: (0, j)))

    # Cost hint for XLA scheduling around the call.
    flops = (3 if similarity == 'l1' else 2) * n * m_pad * d + 3 * n * m_pad
    transcend = n * m_pad if similarity == 'l2' else (n if similarity == 'cos' else 0)
    bytes_acc = (n * d * x.dtype.itemsize + d * m_pad * xn_t.dtype.itemsize
                 + n * m_pad * out_bytes)
    cost = pl.CostEstimate(flops=int(flops), transcendentals=int(transcend),
                           bytes_accessed=int(bytes_acc))

    step_bytes = (2 * tile_n * d * x.dtype.itemsize
                  + 2 * d * tile_m * xn_t.dtype.itemsize
                  + 2 * tile_n * tile_m * out_bytes
                  + 4 * tile_n * tile_m * 4
                  + 2 * tile_m * 4)
    vmem_limit = int(min(_vmem_capacity_bytes(),
                         max(step_bytes + (8 << 20), 32 << 20)))

    out = pl.pallas_call(
        kernel,
        out_shape=jax.ShapeDtypeStruct((n, m_pad), out_dtype),
        grid_spec=pltpu.PrefetchScalarGridSpec(
            num_scalar_prefetch=0,
            grid=grid,
            in_specs=in_specs,
            out_specs=pl.BlockSpec((tile_n, tile_m), lambda i, j: (i, j)),
        ),
        compiler_params=pltpu.CompilerParams(
            dimension_semantics=("parallel", "parallel"),   # shards across v7x's 2 TCs
            vmem_limit_bytes=vmem_limit,
        ),
        cost_estimate=cost,
    )(x, xn_t, *extra_inputs)

    return out[:, :m] if m_pad != m else out


class HardSimMask:
    """Thin module-style wrapper mirroring the PyTorch HardSimMask API."""

    def __init__(self, k, agg=None):
        self.k = k
        self.agg = agg
        self.min = None
        self.max = None

    def min_max(self, similarity, activation, d):
        self.min, self.max = get_min_max(similarity, activation, d)

    def get_min_sim(self, k):
        return (self.max - self.min) * k + self.min

    def __call__(self, x, x_n, similarity, **kw):
        if self.min is None or self.max is None:
            self.min_max(similarity, 'relu', x.shape[1])
        return hard_sim_mask(x, x_n, similarity, float(self.get_min_sim(self.k)),
                             agg=self.agg, **kw)


# ------------------------- pure-JAX reference ---------------------------------
def _ref_sim(x, x_n, similarity):
    d = x.shape[1]
    if similarity == 'dot':
        return x @ x_n.T / d
    if similarity == 'cos':
        xr = x / jnp.maximum(jnp.linalg.norm(x, axis=1, keepdims=True), 1e-12)
        nr = x_n / jnp.maximum(jnp.linalg.norm(x_n, axis=1, keepdims=True), 1e-12)
        return xr @ nr.T
    if similarity == 'l2':
        return -jnp.sqrt(jnp.maximum(
            jnp.sum((x[:, None, :] - x_n[None, :, :]) ** 2, -1), 0.0))
    return -jnp.sum(jnp.abs(x[:, None, :] - x_n[None, :, :]), -1)


def _ref_forward(x, x_n, similarity, threshold, agg):
    sim = _ref_sim(x, x_n, similarity)
    mask = sim < threshold
    out = jnp.where(mask, -jnp.inf, sim) if agg is None else jnp.where(mask, 0.0, sim)
    return out, sim


def _check(got, ref_out, ref_sim, thresh, name):
    got = np.asarray(got)
    want = np.asarray(ref_out)
    sim = np.asarray(ref_sim)
    thresh = float(thresh)
    # Exclude elements whose sim is within a tiny band of the hard threshold:
    # MXU/XLA rounding-order differences there can legitimately flip the mask.
    band = 1e-3 * max(1.0, abs(thresh))
    safe = np.abs(sim - thresh) > band
    fg = np.isfinite(got)
    fw = np.isfinite(want)
    assert np.array_equal(fg[safe], fw[safe]), f"{name}: mask mismatch away from threshold"
    ok = safe & fg & fw
    np.testing.assert_allclose(got[ok], want[ok], rtol=5e-3, atol=5e-3, err_msg=name)


if __name__ == "__main__":
    key = jax.random.PRNGKey(0)
    kx, kn = jax.random.split(key)

    x_full = jax.random.normal(kx, (256, 128), dtype=jnp.float32)
    xn_full = jax.random.normal(kn, (256, 128), dtype=jnp.float32)

    # (name, similarity, spec, agg, x, x_n, kwargs)
    cases = [
        # -inf hard mask, partial last row block (n=250, tile_n=128 -> 2 grid steps)
        ("dot/hard", 'dot', dict(k=0.001, activation='relu'), None,
         x_full[:250], xn_full, dict(tile_n=128)),
        # zeroing mask, m=200 exercises lane padding to 256, multi-step row grid
        ("l2/mean", 'l2', dict(k=0.7, activation='relu'), 'mean',
         jax.nn.sigmoid(x_full), jax.nn.sigmoid(xn_full[:200]), dict(tile_n=64)),
        # cos has no get_min_max entry in the spec -> explicit threshold
        ("cos/hard", 'cos', dict(threshold=0.1), None, x_full, xn_full, dict()),
        # l1 accumulate-over-d path (small d keeps the static unroll small)
        ("l1/hard", 'l1', dict(k=0.4, activation='tanh'), None,
         x_full[:128, :64], xn_full[:128, :64], dict()),
    ]

    for name, similarity, spec, agg, xi, xni, kw in cases:
        d = xi.shape[1]
        if 'threshold' in spec:
            thresh = float(spec['threshold'])
            out = hard_sim_mask(xi, xni, similarity, thresh, agg=agg, **kw)
        else:
            mod = HardSimMask(spec['k'], agg=agg)
            mod.min_max(similarity, spec['activation'], d)
            thresh = float(mod.get_min_sim(mod.k))
            out = mod(xi, xni, similarity, **kw)
        jax.block_until_ready(out)
        ref_out, ref_sim = _ref_forward(xi, xni, similarity, thresh, agg)
        _check(out, ref_out, ref_sim, thresh, name)

    print("KERNEL_OK")
</pallas_src>

<mosaic_0001>
module attributes {stable_mosaic.version = 11 : i64} {
  func.func @kernel(%arg0: i32, %arg1: i32, %arg2: memref<128x128xf32, #tpu.memory_space<vmem>>, %arg3: memref<128x256xf32, #tpu.memory_space<vmem>>, %arg4: memref<128x256xf32, #tpu.memory_space<vmem>>) attributes {dimension_semantics = [#tpu.dimension_semantics<parallel>, #tpu.dimension_semantics<parallel>], iteration_bounds = array<i64: 2, 1>, scalar_prefetch = 0 : i64, scratch_operands = 0 : i64, tpu.core_type = #tpu.core_type<tc>, window_params = [{transform_indices = @transform_0, window_bounds = array<i64: 128, 128>}, {transform_indices = @transform_1, window_bounds = array<i64: 128, 256>}, {transform_indices = @transform_2, window_bounds = array<i64: 128, 256>}]} {
    %c0 = arith.constant 0 : index
    %c0_0 = arith.constant 0 : index
    %0 = vector.load %arg2[%c0, %c0_0] : memref<128x128xf32, #tpu.memory_space<vmem>>, vector<128x128xf32>
    %c0_1 = arith.constant 0 : index
    %c0_2 = arith.constant 0 : index
    %1 = vector.load %arg3[%c0_1, %c0_2] : memref<128x256xf32, #tpu.memory_space<vmem>>, vector<128x256xf32>
    %cst = arith.constant dense<0.000000e+00> : vector<128x256xf32>
    %2 = tpu.matmul %0, %1, %cst {dimension_numbers = #tpu.dot_dimension_numbers<[1], [0], [0], [1], [0, 0, 1, 1], [], []>} : vector<128x128xf32>, vector<128x256xf32>, vector<128x256xf32> -> vector<128x256xf32>
    %cst_3 = arith.constant 7.812500e-03 : f32
    %3 = vector.broadcast %cst_3 : f32 to vector<128x256xf32>
    %4 = arith.mulf %2, %3 : vector<128x256xf32>
    %cst_4 = arith.constant 1.280000e-01 : f32
    %5 = vector.broadcast %cst_4 : f32 to vector<128x256xf32>
    %6 = arith.cmpf olt, %4, %5 : vector<128x256xf32>
    %cst_5 = arith.constant 0xFF800000 : f32
    %7 = vector.broadcast %cst_5 : f32 to vector<128x256xf32>
    %8 = arith.select %6, %7, %4 : vector<128x256xi1>, vector<128x256xf32>
    %c0_6 = arith.constant 0 : index
    %c0_7 = arith.constant 0 : index
    %9 = vector.load %arg4[%c0_6, %c0_7] : memref<128x256xf32, #tpu.memory_space<vmem>>, vector<128x256xf32>
    tpu.vector_store %arg4[%c0_6, %c0_7], %8 {strides = array<i32>} : memref<128x256xf32, #tpu.memory_space<vmem>>, vector<128x256xf32>,
    return
  }
  func.func @transform_0(%arg0: i32, %arg1: i32) -> (i32, i32) {
    %c0_i32 = arith.constant 0 : i32
    %c0_i32_0 = arith.constant 0 : i32
    return %arg0, %c0_i32 : i32, i32
  }
  func.func @transform_1(%arg0: i32, %arg1: i32) -> (i32, i32) {
    %c0_i32 = arith.constant 0 : i32
    %c0_i32_0 = arith.constant 0 : i32
    return %c0_i32, %arg1 : i32, i32
  }
  func.func @transform_2(%arg0: i32, %arg1: i32) -> (i32, i32) {
    %c0_i32 = arith.constant 0 : i32
    return %arg0, %arg1 : i32, i32
  }
}

</mosaic_0001>

<bundles_post_ra>
// kernel: tpu_custom_call.1
= control target key start
LH: loop header
LB: loop body
LE: loop exit
PB: predicated region body
PF: predicated region fallthrough
CT: control target
= control target key end

     0   :  { %7 = vsyncpa [#allocation3], 0  ;;  %s1133_s0 = inlined_call_operand.hbm [shape: f32[250,128], index: 0, kind: input, shape index: {}]   ;;  %s1134_s1 = inlined_call_operand.hbm [shape: f32[128,256], index: 1, kind: input, shape index: {}]   ;;  %s1135_s2 = inlined_call_operand.hbm [shape: f32[250,256], index: 2, kind: output, shape index: {}]  }
   0x1   :  { %9 = vsyncpa [#allocation3 + $0x1], 0 }
   0x2   :  { %10 = vsyncpa [#allocation6], 0 }
   0x3   :  { %11 = vsyncpa [#allocation4], 0 }
   0x4   :  { %13 = vsyncpa [#allocation4 + $0x1], 0  ;;  %s930_s9 = smov 0   ;;  %s932_s10 = smov 0  }
   0x5   :  { %s934_s11 = smov 0   ;;  %s936_s12 = smov 0  }
   0x6   :  { %s938_s13 = smov 0   ;;  %s940_s14 = smov 0  }
   0x7 LB: > { %s628_s15 = sadd.s32 4294967295, %s906_s14   ;;  %s629_s16 = sadd.s32 4294967294, %s906_s14   ;;  %s906_s14 = sphi %s940_s14, %s19_s14   ;;  %s902_s13 = sphi %s938_s13, %s1147_s13   ;;  %s898_s12 = sphi %s936_s12, %s1146_s12   ;;  %s894_s11 = sphi %s934_s11, %s1145_s11   ;;  %s890_s10 = sphi %s932_s10, %s1144_s10   ;;  %s886_s9 = sphi %s930_s9, %s1143_s9  }
   0x8   : > { %p51_p0 = scmp.ne.s32.totalorder %s890_s10, %s886_s9  ;;  %p964_p1 = scmp.eq.s32.totalorder %s628_s15, 0 }
   0x9   : > { %p968_p2 = scmp.eq.s32.totalorder %s628_s15, 1  ;;  %p109_p3 = scmp.eq.s32.totalorder %s629_s16, 1 }
   0xa   : > { %p974_p4 = por %p964_p1, %p51_p0  ;;  %p630_p5 = scmp.ge.s32.totalorder %s906_s14, 1 }
   0xb   : > { %p979_p6 = por %p109_p3, %p51_p0  ;;  %p116_p7 = scmp.lt.s32.totalorder %s906_s14, 3 }
   0xc   : > { %s130_s23 = sshll.u32 %s1134_s1, 4  ;;  %s908_s25 = smov [#allocation5]   ;;  %s131_s23 = int_to_ptr.hbm [resolvable:$true] %s130_s23 }
   0xd   : > { %p987_p8 = pnand %p630_p5, %p116_p7  ;;  %s132_s26 = sshll.u32 %s908_s25, 4  ;;  %s133_s26 = int_to_ptr.vmem [resolvable:$true] %s132_s26 }
   0xe   : > { %p632_p11 = scmp.ge.s32.totalorder %s906_s14, 2  ;;  %s909_s27 = smov 256  }
   0xf   : > { %p689_p9 = pneg %p987_p8  ;;  %s910_s28 = smov 16  }
  0x10   : > { %s31_s29 = sadd.s32 1, %s902_s13  ;;  %s38_s30 = sadd.s32 1, %s894_s11 }
  0x11   : > { %p690_p10 = pnand %p689_p9, %p964_p1  ;;  %p33_p12 = scmp.ge.s32.totalorder %s31_s29, 2 }
  0x12   : > { %p45_p13 = scmp.ne.s32.totalorder %s894_s11, %s890_s10  ;;  %p46_p0 = scmp.eq.s32.totalorder %s906_s14, 0 }
  0x13   : > { %692 = dma.hbm_to_vmem [thread:$0]  (!%p690_p10), %s131_s23, 4096, %s133_s26, [#allocation6], %s909_s27, %s909_s27, %s910_s28  }
  0x14   : > { %s1149_s29 = smov (%p33_p12, %s31_s29), 0  ;;  %p1003_p3 = por %p46_p0, %p45_p13 }
  0x15   : > { %p1009_p5 = por %p968_p2, %p45_p13  ;;  %s35_s5 = ssub.s32 %s902_s13, %s1149_s29 }
  0x16   : > { %p702_p7 = scmp.lt.s32.totalorder %s906_s14, 2  ;;  %p36_p9 = scmp.eq.s32.totalorder %s35_s5, 0 }
  0x17   : > { %s146_s6 = sand.u32 1, %s894_s11   ;;  %s646_s15 = sshll.u32 %s902_s13, 7 }
  0x18   : > { %s633_s7 = sshll.u32 %s146_s6, 7  ;;  %s155_s22 = scalar_lea.hbm %s1133_s0, %s646_s15 }
  0x19   : > { %s1018_s8 = scalar_select %p36_p9, %s894_s11, %s38_s30  }
  0x1a   : > { %s150_s23 = scalar_lea.vmem [#allocation2], %s633_s7  ;;  %s156_s18 = sshll.u32 %s155_s22, 4  ;;  %s157_s18 = int_to_ptr.hbm [resolvable:$true] %s156_s18 }
  0x1b   : > { %s158_s25 = sshll.u32 %s150_s23, 4  ;;  %p694_p2 = pnand %p702_p7, %p1003_p3  ;;  %s159_s25 = int_to_ptr.vmem [resolvable:$true] %s158_s25 }
  0x1c   : > { %s147_s26 = scalar_lea.sflag [#allocation3], %s146_s6  ;;  %s911_s27 = smov 128  }
  0x1d   : > { %s912_s28 = smov 8   ;;  %170 = sbr.rel (%p987_p8) target bundleno = 266 (0x10a), region = 28 }
  0x1e   : > { %696 = dma.hbm_to_vmem [thread:$0]  (!%p694_p2), %s157_s18, 2048, %s159_s25, %s147_s26, %s911_s27, %s911_s27, %s912_s28  }
  0x1f   : > { %s1029_s30 = sand.u32 (!%p987_p8), 1, %s890_s10  }
  0x20   : > { %s637_s5 = sshll.u32 (!%p987_p8), %s1029_s30, 7  ;;  %s173_s7 = scalar_lea.sflag (!%p987_p8), [#allocation3], %s1029_s30 }
  0x21   : > { %s1033_s15 = scalar_lea.vmem (!%p987_p8), [#allocation2], %s637_s5 }
  0x22   : > { %873 = dma.done.wait (%p974_p4), %s173_s7, 2048  }
  0x23   : > { %875 = vsyncadd (%p974_p4), %s173_s7, 4294965248 }
  0x24   : > { %877 = dma.done.wait (%p964_p1), [#allocation6], 4096  }
  0x25   : > { %879 = vsyncadd (%p964_p1), [#allocation6], 4294963200  ;;  %v253_v0 = vld [vmem:[#allocation5 + $0xf0] sm:$0xff]  ;;  %v254_v1 = vld [vmem:[#allocation5 + $0xf8] sm:$0xff]  ;;  %s639_s17 = sshll.u32 %s1029_s30, 8  ;;  %s648_s24 = sshll.u32 %s898_s12, 8 }
  0x26   : > { %v251_v2 = vld [vmem:[#allocation5 + $0xe0] sm:$0xff]  ;;  %649 = vmatpush.msra.mxu2 %v253_v0  ;;  %665 = vmatpush.msra.mxu3 %v254_v1  ;;  %v252_v3 = vld [vmem:[#allocation5 + $0xe8] sm:$0xff]  ;;  %v249_v4 = vld [vmem:[#allocation5 + $0xd0] sm:$0xff]  ;;  %s1060_s19 = scalar_lea.vmem [#allocation7], %s639_s17  ;;  %s528_s16 = scalar_lea.hbm %s1135_s2, %s648_s24 }
  0x27   : > { %v250_v5 = vld [vmem:[#allocation5 + $0xd8] sm:$0xff]  ;;  %255 = vmatpush.msra.mxu0 %v253_v0  ;;  %320 = vmatpush.msra.mxu1 %v254_v1  ;;  %v247_v6 = vld [vmem:[#allocation5 + $0xc0] sm:$0xff]  ;;  %v248_v7 = vld [vmem:[#allocation5 + $0xc8] sm:$0xff]  ;;  %s529_s12 = sshll.u32 %s1060_s19, 4  ;;  %s531_s21 = sshll.u32 %s528_s16, 4  ;;  %s530_s12 = int_to_ptr.vmem [resolvable:$true] %s529_s12  ;;  %s532_s21 = int_to_ptr.hbm [resolvable:$true] %s531_s21 }
  0x28   : > { %650 = vmatpush.msra.mxu2 %v251_v2  ;;  %666 = vmatpush.msra.mxu3 %v252_v3  ;;  %v245_v8 = vld [vmem:[#allocation5 + $0xb0] sm:$0xff]  ;;  %v246_v9 = vld [vmem:[#allocation5 + $0xb8] sm:$0xff]  ;;  %v243_v10 = vld [vmem:[#allocation5 + $0xa0] sm:$0xff]  ;;  %s514_s22 = scalar_lea.sflag [#allocation4], %s1029_s30  ;;  %s834_s23 = sshra.s32 %s532_s21, 4  ;;  %s835_s23 = int_to_ptr.hbm [resolvable:$true] %s834_s23 }
  0x29   : > { %256 = vmatpush.msra.mxu0 %v251_v2  ;;  %321 = vmatpush.msra.mxu1 %v252_v3  ;;  %v244_v11 = vld [vmem:[#allocation5 + $0xa8] sm:$0xff]  ;;  %v241_v12 = vld [vmem:[#allocation5 + $0x90] sm:$0xff]  ;;  %v242_v13 = vld [vmem:[#allocation5 + $0x98] sm:$0xff]  ;;  %s836_s25 = scalar_lea.hbm %s835_s23, 256  ;;  %s840_s27 = scalar_lea.hbm %s1135_s2, 512 }
  0x2a   : > { %651 = vmatpush.msra.mxu2 %v249_v4  ;;  %667 = vmatpush.msra.mxu3 %v250_v5  ;;  %v239_v14 = vld [vmem:[#allocation5 + $0x80] sm:$0xff]  ;;  %v240_v15 = vld [vmem:[#allocation5 + $0x88] sm:$0xff]  ;;  %v237_v16 = vld [vmem:[#allocation5 + $0x70] sm:$0xff]  ;;  %p837_p1 = scmp.ne.s32.totalorder %s835_s23, %s836_s25  ;;  %p841_p10 = scmp.lt.s32.totalorder %s835_s23, %s1135_s2 }
  0x2b   : > { %257 = vmatpush.msra.mxu0 %v249_v4  ;;  %322 = vmatpush.msra.mxu1 %v250_v5  ;;  %v238_v17 = vld [vmem:[#allocation5 + $0x78] sm:$0xff]  ;;  %v235_v18 = vld [vmem:[#allocation5 + $0x60] sm:$0xff]  ;;  %v236_v19 = vld [vmem:[#allocation5 + $0x68] sm:$0xff]  ;;  %p842_p12 = scmp.lt.s32.totalorder %s840_s27, %s836_s25 }
  0x2c   : > { %652 = vmatpush.msra.mxu2 %v247_v6  ;;  %668 = vmatpush.msra.mxu3 %v248_v7  ;;  %v233_v20 = vld [vmem:[#allocation5 + $0x50] sm:$0xff]  ;;  %v234_v21 = vld [vmem:[#allocation5 + $0x58] sm:$0xff]  ;;  %v231_v22 = vld [vmem:[#allocation5 + $0x40] sm:$0xff]  ;;  %p838_p4 = pnand %p837_p1, %p1009_p5 }
  0x2d   : > { %258 = vmatpush.msra.mxu0 %v247_v6  ;;  %323 = vmatpush.msra.mxu1 %v248_v7  ;;  %v232_v23 = vld [vmem:[#allocation5 + $0x48] sm:$0xff]  ;;  %v229_v24 = vld [vmem:[#allocation5 + $0x30] sm:$0xff]  ;;  %v230_v25 = vld [vmem:[#allocation5 + $0x38] sm:$0xff]  ;;  %p843_p13 = por %p842_p12, %p841_p10 }
  0x2e   : > { %653 = vmatpush.msra.mxu2 %v245_v8  ;;  %669 = vmatpush.msra.mxu3 %v246_v9  ;;  %v227_v26 = vld [vmem:[#allocation5 + $0x20] sm:$0xff]  ;;  %v228_v27 = vld [vmem:[#allocation5 + $0x28] sm:$0xff]  ;;  %v225_v28 = vld [vmem:[#allocation5 + $0x10] sm:$0xff]  ;;  %p839_p8 = pneg %p838_p4 }
  0x2f   : > { %259 = vmatpush.msra.mxu0 %v245_v8  ;;  %324 = vmatpush.msra.mxu1 %v246_v9  ;;  %v226_v29 = vld [vmem:[#allocation5 + $0x18] sm:$0xff]  ;;  %v223_v30 = vld [vmem:[#allocation5] sm:$0xff]  ;;  %v224_v31 = vld [vmem:[#allocation5 + $0x8] sm:$0xff] }
  0x30   : > { %654 = vmatpush.msra.mxu2 %v243_v10  ;;  %670 = vmatpush.msra.mxu3 %v244_v11  ;;  %v215_v32 = vld [vmem:[%s1033_s15 + $0x40] sm:$0xff]  ;;  %v216_v34 = vld [vmem:[%s1033_s15 + $0x48] sm:$0xff]  ;;  %v217_v36 = vld [vmem:[%s1033_s15 + $0x50] sm:$0xff]  ;;  %p844_p0 = pnand %p843_p13, %p839_p8 }
  0x31   : > { %260 = vmatpush.msra.mxu0 %v243_v10  ;;  %325 = vmatpush.msra.mxu1 %v244_v11  ;;  %v207_v33 = vld [vmem:[%s1033_s15] sm:$0xff]  ;;  %v208_v35 = vld [vmem:[%s1033_s15 + $0x8] sm:$0xff]  ;;  %v209_v37 = vld [vmem:[%s1033_s15 + $0x10] sm:$0xff] }
  0x32   : > { %655 = vmatpush.msra.mxu2 %v241_v12  ;;  %671 = vmatpush.msra.mxu3 %v242_v13  ;;  %v218_v38 = vld [vmem:[%s1033_s15 + $0x58] sm:$0xff]  ;;  %v219_v40 = vld [vmem:[%s1033_s15 + $0x60] sm:$0xff]  ;;  %v220_v42 = vld [vmem:[%s1033_s15 + $0x68] sm:$0xff] }
  0x33   : > { %261 = vmatpush.msra.mxu0 %v241_v12  ;;  %326 = vmatpush.msra.mxu1 %v242_v13  ;;  %v210_v39 = vld [vmem:[%s1033_s15 + $0x18] sm:$0xff]  ;;  %v211_v41 = vld [vmem:[%s1033_s15 + $0x20] sm:$0xff]  ;;  %v212_v43 = vld [vmem:[%s1033_s15 + $0x28] sm:$0xff] }
  0x34   : > { %656 = vmatpush.msra.mxu2 %v239_v14  ;;  %672 = vmatpush.msra.mxu3 %v240_v15  ;;  %v221_v44 = vld [vmem:[%s1033_s15 + $0x70] sm:$0xff]  ;;  %v222_v46 = vld [vmem:[%s1033_s15 + $0x78] sm:$0xff] }
  0x35   : > { %262 = vmatpush.msra.mxu0 %v239_v14  ;;  %327 = vmatpush.msra.mxu1 %v240_v15  ;;  %v213_v45 = vld [vmem:[%s1033_s15 + $0x30] sm:$0xff]  ;;  %v214_v47 = vld [vmem:[%s1033_s15 + $0x38] sm:$0xff] }
  0x36   : > { %657 = vmatpush.msra.mxu2 %v237_v16  ;;  %673 = vmatpush.msra.mxu3 %v238_v17 }
  0x37   : > { %263 = vmatpush.msra.mxu0 %v237_v16  ;;  %328 = vmatpush.msra.mxu1 %v238_v17 }
  0x38   : > { %658 = vmatpush.msra.mxu2 %v235_v18  ;;  %674 = vmatpush.msra.mxu3 %v236_v19 }
  0x39   : > { %264 = vmatpush.msra.mxu0 %v235_v18  ;;  %329 = vmatpush.msra.mxu1 %v236_v19 }
  0x3a   : > { %659 = vmatpush.msra.mxu2 %v233_v20  ;;  %675 = vmatpush.msra.mxu3 %v234_v21 }
  0x3b   : > { %265 = vmatpush.msra.mxu0 %v233_v20  ;;  %330 = vmatpush.msra.mxu1 %v234_v21 }
  0x3c   : > { %660 = vmatpush.msra.mxu2 %v231_v22  ;;  %676 = vmatpush.msra.mxu3 %v232_v23 }
  0x3d   : > { %266 = vmatpush.msra.mxu0 %v231_v22  ;;  %331 = vmatpush.msra.mxu1 %v232_v23 }
  0x3e   : > { %661 = vmatpush.msra.mxu2 %v229_v24  ;;  %677 = vmatpush.msra.mxu3 %v230_v25 }
  0x3f   : > { %267 = vmatpush.msra.mxu0 %v229_v24  ;;  %332 = vmatpush.msra.mxu1 %v230_v25 }
  0x40   : > { %662 = vmatpush.msra.mxu2 %v227_v26  ;;  %678 = vmatpush.msra.mxu3 %v228_v27 }
  0x41   : > { %268 = vmatpush.msra.mxu0 %v227_v26  ;;  %333 = vmatpush.msra.mxu1 %v228_v27 }
  0x42   : > { %663 = vmatpush.msra.mxu2 %v225_v28  ;;  %679 = vmatpush.msra.mxu3 %v226_v29 }
  0x43   : > { %269 = vmatpush.msra.mxu0 %v225_v28  ;;  %334 = vmatpush.msra.mxu1 %v226_v29 }
  0x44   : > { %664 = vmatpush.msra.mxu2 %v223_v30  ;;  %680 = vmatpush.msra.mxu3 %v224_v31 }
  0x45   : > { %295 = vmatmul.f32.vlgmr.msra.gmra.mxu2 %v215_v32  ;;  %360 = vmatmul.f32.vlgmr.msra.gmra.mxu3 %v215_v32 }
  0x46   : > { %270 = vmatpush.msra.mxu0 %v223_v30  ;;  %335 = vmatpush.msra.mxu1 %v224_v31 }
  0x47   : > { %271 = vmatmul.f32.vlgmr.msra.gmra.mxu0 %v207_v33  ;;  %336 = vmatmul.f32.vlgmr.msra.gmra.mxu1 %v207_v33 }
  0x4d   : > { %298 = vmatmul.f32.gmra.mxu2 %v216_v34  ;;  %363 = vmatmul.f32.gmra.mxu3 %v216_v34 }
  0x4f   : > { %274 = vmatmul.f32.gmra.mxu0 %v208_v35  ;;  %339 = vmatmul.f32.gmra.mxu1 %v208_v35 }
  0x55   : > { %301 = vmatmul.f32.gmra.mxu2 %v217_v36  ;;  %366 = vmatmul.f32.gmra.mxu3 %v217_v36 }
  0x57   : > { %277 = vmatmul.f32.gmra.mxu0 %v209_v37  ;;  %342 = vmatmul.f32.gmra.mxu1 %v209_v37 }
  0x5d   : > { %304 = vmatmul.f32.gmra.mxu2 %v218_v38  ;;  %369 = vmatmul.f32.gmra.mxu3 %v218_v38 }
  0x5f   : > { %280 = vmatmul.f32.gmra.mxu0 %v210_v39  ;;  %345 = vmatmul.f32.gmra.mxu1 %v210_v39 }
  0x65   : > { %307 = vmatmul.f32.gmra.mxu2 %v219_v40  ;;  %372 = vmatmul.f32.gmra.mxu3 %v219_v40 }
  0x67   : > { %283 = vmatmul.f32.gmra.mxu0 %v211_v41  ;;  %348 = vmatmul.f32.gmra.mxu1 %v211_v41 }
  0x6d   : > { %310 = vmatmul.f32.gmra.mxu2 %v220_v42  ;;  %375 = vmatmul.f32.gmra.mxu3 %v220_v42 }
  0x6f   : > { %286 = vmatmul.f32.gmra.mxu0 %v212_v43  ;;  %351 = vmatmul.f32.gmra.mxu1 %v212_v43 }
  0x75   : > { %313 = vmatmul.f32.gmra.mxu2 %v221_v44  ;;  %378 = vmatmul.f32.gmra.mxu3 %v221_v44 }
  0x77   : > { %289 = vmatmul.f32.gmra.mxu0 %v213_v45  ;;  %354 = vmatmul.f32.gmra.mxu1 %v213_v45 }
  0x7d   : > { %316 = vmatmul.f32.gmra.mxu2 %v222_v46  ;;  %381 = vmatmul.f32.gmra.mxu3 %v222_v46 }
  0x7f   : > { %292 = vmatmul.f32.gmra.mxu0 %v214_v47  ;;  %357 = vmatmul.f32.gmra.mxu1 %v214_v47 }
  0xc4   : > { %v272_v48 = vpop.f32.mrf.mxu0  ;;  %v337_v49 = vpop.f32.mrf.mxu1 }
  0xc5   : > { %v385_v50 = vmul.f32 0.0078125, %v272_v48  ;;  %v386_v51 = vmul.f32 0.0078125, %v337_v49 }
  0xc7   : > { %vm417_vm0 = vcmp.lt.f32.partialorder %v385_v50, 0.128  ;;  %vm418_vm1 = vcmp.lt.f32.partialorder %v386_v51, 0.128 }
  0xc8   : > { %v449_v52 = vsel %vm417_vm0, -inf, %v385_v50  ;;  %v450_v53 = vsel %vm418_vm1, -inf, %v386_v51  ;;  %v296_v54 = vpop.f32.mrf.mxu2  ;;  %v361_v55 = vpop.f32.mrf.mxu3 }
  0xc9   : > { %481 = vst [vmem:[%s1060_s19] sm:$0xff] %v449_v52  ;;  %v401_v56 = vmul.f32 0.0078125, %v296_v54  ;;  %v402_v57 = vmul.f32 0.0078125, %v361_v55 }
  0xca   : > { %482 = vst [vmem:[%s1060_s19 + $0x8] sm:$0xff] %v450_v53 }
  0xcb   : > { %vm433_vm2 = vcmp.lt.f32.partialorder %v401_v56, 0.128  ;;  %vm434_vm3 = vcmp.lt.f32.partialorder %v402_v57, 0.128 }
  0xcc   : > { %v465_v58 = vsel %vm433_vm2, -inf, %v401_v56  ;;  %v466_v59 = vsel %vm434_vm3, -inf, %v402_v57  ;;  %v275_v60 = vpop.f32.mrf.mxu0  ;;  %v340_v61 = vpop.f32.mrf.mxu1 }
  0xcd   : > { %497 = vst [vmem:[%s1060_s19 + $0x80] sm:$0xff] %v465_v58  ;;  %v387_v62 = vmul.f32 0.0078125, %v275_v60  ;;  %v388_v63 = vmul.f32 0.0078125, %v340_v61 }
  0xce   : > { %498 = vst [vmem:[%s1060_s19 + $0x88] sm:$0xff] %v466_v59 }
  0xcf   : > { %vm419_vm4 = vcmp.lt.f32.partialorder %v387_v62, 0.128  ;;  %vm420_vm5 = vcmp.lt.f32.partialorder %v388_v63, 0.128 }
  0xd0   : > { %v451_v0 = vsel %vm419_vm4, -inf, %v387_v62  ;;  %v452_v1 = vsel %vm420_vm5, -inf, %v388_v63  ;;  %v299_v2 = vpop.f32.mrf.mxu2  ;;  %v364_v3 = vpop.f32.mrf.mxu3 }
  0xd1   : > { %483 = vst [vmem:[%s1060_s19 + $0x10] sm:$0xff] %v451_v0  ;;  %v403_v4 = vmul.f32 0.0078125, %v299_v2  ;;  %v404_v5 = vmul.f32 0.0078125, %v364_v3 }
  0xd2   : > { %484 = vst [vmem:[%s1060_s19 + $0x18] sm:$0xff] %v452_v1 }
  0xd3   : > { %vm435_vm6 = vcmp.lt.f32.partialorder %v403_v4, 0.128  ;;  %vm436_vm7 = vcmp.lt.f32.partialorder %v404_v5, 0.128 }
  0xd4   : > { %v467_v6 = vsel %vm435_vm6, -inf, %v403_v4  ;;  %v468_v7 = vsel %vm436_vm7, -inf, %v404_v5  ;;  %v278_v8 = vpop.f32.mrf.mxu0  ;;  %v343_v9 = vpop.f32.mrf.mxu1 }
  0xd5   : > { %499 = vst [vmem:[%s1060_s19 + $0x90] sm:$0xff] %v467_v6  ;;  %v389_v10 = vmul.f32 0.0078125, %v278_v8  ;;  %v390_v11 = vmul.f32 0.0078125, %v343_v9 }
  0xd6   : > { %500 = vst [vmem:[%s1060_s19 + $0x98] sm:$0xff] %v468_v7 }
  0xd7   : > { %vm421_vm8 = vcmp.lt.f32.partialorder %v389_v10, 0.128  ;;  %vm422_vm9 = vcmp.lt.f32.partialorder %v390_v11, 0.128 }
  0xd8   : > { %v453_v12 = vsel %vm421_vm8, -inf, %v389_v10  ;;  %v454_v13 = vsel %vm422_vm9, -inf, %v390_v11  ;;  %v302_v14 = vpop.f32.mrf.mxu2  ;;  %v367_v15 = vpop.f32.mrf.mxu3 }
  0xd9   : > { %485 = vst [vmem:[%s1060_s19 + $0x20] sm:$0xff] %v453_v12  ;;  %v405_v16 = vmul.f32 0.0078125, %v302_v14  ;;  %v406_v17 = vmul.f32 0.0078125, %v367_v15 }
  0xda   : > { %486 = vst [vmem:[%s1060_s19 + $0x28] sm:$0xff] %v454_v13 }
  0xdb   : > { %vm437_vm10 = vcmp.lt.f32.partialorder %v405_v16, 0.128  ;;  %vm438_vm11 = vcmp.lt.f32.partialorder %v406_v17, 0.128 }
  0xdc   : > { %v469_v18 = vsel %vm437_vm10, -inf, %v405_v16  ;;  %v470_v19 = vsel %vm438_vm11, -inf, %v406_v17  ;;  %v281_v20 = vpop.f32.mrf.mxu0  ;;  %v346_v21 = vpop.f32.mrf.mxu1 }
  0xdd   : > { %501 = vst [vmem:[%s1060_s19 + $0xa0] sm:$0xff] %v469_v18  ;;  %v391_v22 = vmul.f32 0.0078125, %v281_v20  ;;  %v392_v23 = vmul.f32 0.0078125, %v346_v21 }
  0xde   : > { %502 = vst [vmem:[%s1060_s19 + $0xa8] sm:$0xff] %v470_v19 }
  0xdf   : > { %vm423_vm12 = vcmp.lt.f32.partialorder %v391_v22, 0.128  ;;  %vm424_vm13 = vcmp.lt.f32.partialorder %v392_v23, 0.128 }
  0xe0   : > { %v455_v24 = vsel %vm423_vm12, -inf, %v391_v22  ;;  %v456_v25 = vsel %vm424_vm13, -inf, %v392_v23  ;;  %v305_v26 = vpop.f32.mrf.mxu2  ;;  %v370_v27 = vpop.f32.mrf.mxu3 }
  0xe1   : > { %487 = vst [vmem:[%s1060_s19 + $0x30] sm:$0xff] %v455_v24  ;;  %v407_v28 = vmul.f32 0.0078125, %v305_v26  ;;  %v408_v29 = vmul.f32 0.0078125, %v370_v27 }
  0xe2   : > { %488 = vst [vmem:[%s1060_s19 + $0x38] sm:$0xff] %v456_v25 }
  0xe3   : > { %vm439_vm14 = vcmp.lt.f32.partialorder %v407_v28, 0.128  ;;  %vm440_vm15 = vcmp.lt.f32.partialorder %v408_v29, 0.128 }
  0xe4   : > { %v471_v30 = vsel %vm439_vm14, -inf, %v407_v28  ;;  %v472_v31 = vsel %vm440_vm15, -inf, %v408_v29  ;;  %v284_v32 = vpop.f32.mrf.mxu0  ;;  %v349_v33 = vpop.f32.mrf.mxu1 }
  0xe5   : > { %503 = vst [vmem:[%s1060_s19 + $0xb0] sm:$0xff] %v471_v30  ;;  %v393_v34 = vmul.f32 0.0078125, %v284_v32  ;;  %v394_v35 = vmul.f32 0.0078125, %v349_v33 }
  0xe6   : > { %504 = vst [vmem:[%s1060_s19 + $0xb8] sm:$0xff] %v472_v31 }
  0xe7   : > { %vm425_vm0 = vcmp.lt.f32.partialorder %v393_v34, 0.128  ;;  %vm426_vm1 = vcmp.lt.f32.partialorder %v394_v35, 0.128 }
  0xe8   : > { %v457_v36 = vsel %vm425_vm0, -inf, %v393_v34  ;;  %v458_v37 = vsel %vm426_vm1, -inf, %v394_v35  ;;  %v308_v38 = vpop.f32.mrf.mxu2  ;;  %v373_v39 = vpop.f32.mrf.mxu3 }
  0xe9   : > { %489 = vst [vmem:[%s1060_s19 + $0x40] sm:$0xff] %v457_v36  ;;  %v409_v40 = vmul.f32 0.0078125, %v308_v38  ;;  %v410_v41 = vmul.f32 0.0078125, %v373_v39 }
  0xea   : > { %490 = vst [vmem:[%s1060_s19 + $0x48] sm:$0xff] %v458_v37 }
  0xeb   : > { %vm441_vm2 = vcmp.lt.f32.partialorder %v409_v40, 0.128  ;;  %vm442_vm3 = vcmp.lt.f32.partialorder %v410_v41, 0.128 }
  0xec   : > { %v473_v42 = vsel %vm441_vm2, -inf, %v409_v40  ;;  %v474_v43 = vsel %vm442_vm3, -inf, %v410_v41  ;;  %v287_v44 = vpop.f32.mrf.mxu0  ;;  %v352_v45 = vpop.f32.mrf.mxu1 }
  0xed   : > { %505 = vst [vmem:[%s1060_s19 + $0xc0] sm:$0xff] %v473_v42  ;;  %v395_v46 = vmul.f32 0.0078125, %v287_v44  ;;  %v396_v47 = vmul.f32 0.0078125, %v352_v45 }
  0xee   : > { %506 = vst [vmem:[%s1060_s19 + $0xc8] sm:$0xff] %v474_v43 }
  0xef   : > { %vm427_vm4 = vcmp.lt.f32.partialorder %v395_v46, 0.128  ;;  %vm428_vm5 = vcmp.lt.f32.partialorder %v396_v47, 0.128 }
  0xf0   : > { %v459_v48 = vsel %vm427_vm4, -inf, %v395_v46  ;;  %v460_v49 = vsel %vm428_vm5, -inf, %v396_v47  ;;  %v311_v50 = vpop.f32.mrf.mxu2  ;;  %v376_v51 = vpop.f32.mrf.mxu3 }
  0xf1   : > { %491 = vst [vmem:[%s1060_s19 + $0x50] sm:$0xff] %v459_v48  ;;  %v411_v52 = vmul.f32 0.0078125, %v311_v50  ;;  %v412_v53 = vmul.f32 0.0078125, %v376_v51 }
  0xf2   : > { %492 = vst [vmem:[%s1060_s19 + $0x58] sm:$0xff] %v460_v49 }
  0xf3   : > { %vm443_vm6 = vcmp.lt.f32.partialorder %v411_v52, 0.128  ;;  %vm444_vm7 = vcmp.lt.f32.partialorder %v412_v53, 0.128 }
  0xf4   : > { %v475_v54 = vsel %vm443_vm6, -inf, %v411_v52  ;;  %v476_v55 = vsel %vm444_vm7, -inf, %v412_v53  ;;  %v290_v56 = vpop.f32.mrf.mxu0  ;;  %v355_v57 = vpop.f32.mrf.mxu1 }
  0xf5   : > { %507 = vst [vmem:[%s1060_s19 + $0xd0] sm:$0xff] %v475_v54  ;;  %v397_v58 = vmul.f32 0.0078125, %v290_v56  ;;  %v398_v59 = vmul.f32 0.0078125, %v355_v57 }
  0xf6   : > { %508 = vst [vmem:[%s1060_s19 + $0xd8] sm:$0xff] %v476_v55 }
  0xf7   : > { %vm429_vm8 = vcmp.lt.f32.partialorder %v397_v58, 0.128  ;;  %vm430_vm9 = vcmp.lt.f32.partialorder %v398_v59, 0.128 }
  0xf8   : > { %v461_v60 = vsel %vm429_vm8, -inf, %v397_v58  ;;  %v462_v61 = vsel %vm430_vm9, -inf, %v398_v59  ;;  %v314_v62 = vpop.f32.mrf.mxu2  ;;  %v379_v63 = vpop.f32.mrf.mxu3 }
  0xf9   : > { %493 = vst [vmem:[%s1060_s19 + $0x60] sm:$0xff] %v461_v60  ;;  %v413_v0 = vmul.f32 0.0078125, %v314_v62  ;;  %v414_v1 = vmul.f32 0.0078125, %v379_v63 }
  0xfa   : > { %494 = vst [vmem:[%s1060_s19 + $0x68] sm:$0xff] %v462_v61 }
  0xfb   : > { %vm445_vm10 = vcmp.lt.f32.partialorder %v413_v0, 0.128  ;;  %vm446_vm11 = vcmp.lt.f32.partialorder %v414_v1, 0.128 }
  0xfc   : > { %v477_v2 = vsel %vm445_vm10, -inf, %v413_v0  ;;  %v478_v3 = vsel %vm446_vm11, -inf, %v414_v1  ;;  %v293_v4 = vpop.f32.mrf.mxu0  ;;  %v358_v5 = vpop.f32.mrf.mxu1 }
  0xfd   : > { %509 = vst [vmem:[%s1060_s19 + $0xe0] sm:$0xff] %v477_v2  ;;  %v399_v6 = vmul.f32 0.0078125, %v293_v4  ;;  %v400_v7 = vmul.f32 0.0078125, %v358_v5 }
  0xfe   : > { %510 = vst [vmem:[%s1060_s19 + $0xe8] sm:$0xff] %v478_v3 }
  0xff   : > { %vm431_vm12 = vcmp.lt.f32.partialorder %v399_v6, 0.128  ;;  %vm432_vm13 = vcmp.lt.f32.partialorder %v400_v7, 0.128 }
 0x100   : > { %v463_v8 = vsel %vm431_vm12, -inf, %v399_v6  ;;  %v464_v9 = vsel %vm432_vm13, -inf, %v400_v7  ;;  %v317_v10 = vpop.f32.mrf.mxu2  ;;  %v382_v11 = vpop.f32.mrf.mxu3 }
 0x101   : > { %495 = vst [vmem:[%s1060_s19 + $0x70] sm:$0xff] %v463_v8  ;;  %v415_v12 = vmul.f32 0.0078125, %v317_v10  ;;  %v416_v13 = vmul.f32 0.0078125, %v382_v11 }
 0x102   : > { %496 = vst [vmem:[%s1060_s19 + $0x78] sm:$0xff] %v464_v9 }
 0x103   : > { %vm447_vm14 = vcmp.lt.f32.partialorder %v415_v12, 0.128  ;;  %vm448_vm15 = vcmp.lt.f32.partialorder %v416_v13, 0.128 }
 0x104   : > { %v479_v14 = vsel %vm447_vm14, -inf, %v415_v12  ;;  %v480_v15 = vsel %vm448_vm15, -inf, %v416_v13 }
 0x105   : > { %511 = vst [vmem:[%s1060_s19 + $0xf0] sm:$0xff] %v479_v14 }
 0x106   : > { %512 = vst [vmem:[%s1060_s19 + $0xf8] sm:$0xff] %v480_v15 }
 0x107   : > { %847 = shalt.err (!%p844_p0)
}
 0x108   : > { %s913_s30 = smov 256   ;;  %s914_s7 = smov 16  }
 0x109   : > { %687 = dma.vmem_to_hbm [thread:$0]  (%p1009_p5), %s530_s12, 4096, %s532_s21, %s514_s22, %s913_s30, %s913_s30, %s914_s7  }
 0x10a PF: > { %s546_s15 = sand.u32 1, %s886_s9   ;;  %p698_p3 = pnand %p632_p11, %p979_p6 }
 0x10b   : > { %s547_s17 = scalar_lea.sflag [#allocation4], %s546_s15 }
 0x10c   : > { %p699_p7 = pneg %p698_p3 }
 0x10e   : > { %881 = dma.done.wait (%p699_p7), %s547_s17, 4096  }
 0x10f   : > { %883 = vsyncadd (%p699_p7), %s547_s17, 4294963200  ;;  %s19_s14 = sadd.s32 1, %s906_s14   ;;  %s1143_s9 = smov %s890_s10 }
 0x110   : > { %p16_p9 = scmp.ge.s32.totalorder %s19_s14, 4   ;;  %s1144_s10 = smov %s894_s11 }
 0x111   : > { %s1145_s11 = smov %s1018_s8  ;;  %s1146_s12 = smov %s902_s13 }
 0x112   : > { %s1147_s13 = smov %s1149_s29  ;;  %18 = sbr.rel (!%p16_p9) target bundleno = 7 (0x7), region = 78 }
 0x117   :  { %553 = vsyncpa [#allocation3], 1 }
 0x118   :  { %555 = vsyncpa [#allocation3 + $0x1], 1 }
 0x119   :  { %556 = vsyncpa [#allocation6], 1 }
 0x11a   :  { %557 = vsyncpa [#allocation4], 1 }
 0x11b   :  { %559 = vsyncpa [#allocation4 + $0x1], 1 }

</bundles_post_ra>
